<compile_context>
chip_gen: v5e
topology: v5e:2x2
jax: 0.10.0
libtpu: 0.0.40
codegen_flags: <defaults>
</compile_context>

<pallas_src>
import functools

import jax
import jax.numpy as jnp
from jax.experimental import pallas as pl
from jax.experimental.pallas import tpu as pltpu

_BN_EPS = 1e-5


def _round_up(x, m):
    return (x + m - 1) // m * m


def _fused_conv_bn_relu_kernel(w_ref, p_ref, gamma_ref, beta_ref, o_ref,
                               acc_sum, acc_sq, *, m_true, tile_m):
    """One fused kernel over M tiles:
       y_tile = W @ P_tile (bf16 MXU, f32 acc); stage y into the resident output slab;
       accumulate per-channel sum / sumsq; on the last tile fold BN and apply scale/shift
       + ReLU to the whole slab in place."""
    mi = pl.program_id(0)

    @pl.when(mi == 0)
    def _():
        acc_sum[...] = jnp.zeros_like(acc_sum)
        acc_sq[...] = jnp.zeros_like(acc_sq)

    # (c_sub, tile_m) = (c_sub, k_pad) @ (k_pad, tile_m), f32 accumulation on the MXU.
    y = jnp.dot(w_ref[...], p_ref[...], preferred_element_type=jnp.float32)

    # Per-tile cross-lane reductions (XLU slot) into tiny (c_sub, 1) accumulators.
    acc_sum[...] += jnp.sum(y, axis=1, keepdims=True)
    acc_sq[...] += jnp.sum(y * y, axis=1, keepdims=True)

    # Stage the raw conv tile into the resident output block (one HBM writeback at the end).
    start = pl.multiple_of(mi * tile_m, 128)
    o_ref[:, pl.ds(start, tile_m)] = y

    @pl.when(mi == pl.num_programs(0) - 1)
    def _():
        # Train-mode BatchNorm folded to per-channel scale/shift (biased variance, clamped
        # at 0), applied to the whole resident slab with a single FMA + ReLU.
        inv_m = jnp.float32(1.0 / m_true)
        mean = acc_sum[...] * inv_m
        var = jnp.maximum(acc_sq[...] * inv_m - mean * mean, 0.0)
        inv_std = jax.lax.rsqrt(var + _BN_EPS)               # EUP
        scale = gamma_ref[...] * inv_std                      # (c_sub, 1)
        shift = beta_ref[...] - mean * scale                  # (c_sub, 1)
        o_ref[...] = jnp.maximum(o_ref[...] * scale + shift, 0.0)


def _im2col_t(x_nhwc, k, stride, padding):
    """Transposed im2col: patches[K, M], K ordered (kh, kw, cin), M ordered (n, ho, wo)."""
    n, h, w, cin = x_nhwc.shape
    xp = jnp.pad(x_nhwc, ((0, 0), (padding, padding), (padding, padding), (0, 0)))
    hout = (h + 2 * padding - k) // stride + 1
    wout = (w + 2 * padding - k) // stride + 1
    cols = []
    for kh in range(k):
        for kw in range(k):
            cols.append(
                xp[:, kh:kh + hout * stride:stride, kw:kw + wout * stride:stride, :]
            )  # (N, Hout, Wout, Cin)
    p = jnp.stack(cols, axis=0)              # (k*k, N, Hout, Wout, Cin)
    p = jnp.transpose(p, (0, 4, 1, 2, 3))    # (k*k, Cin, N, Hout, Wout)
    return p.reshape(k * k * cin, n * hout * wout), hout, wout


def make_precm1_weight(key, in_channels, out_channels, kernel_size):
    """p4 group conv weight: base (Cout//4, Cin, k, k) rotated 4x, stacked -> (Cout, Cin, k, k)."""
    assert out_channels % 4 == 0, "PreCM1 (p4) needs out_channels divisible by 4"
    base = jax.random.normal(
        key, (out_channels // 4, in_channels, kernel_size, kernel_size), jnp.float32
    ) * (1.0 / (in_channels * kernel_size * kernel_size) ** 0.5)
    rots = [jnp.rot90(base, r, axes=(2, 3)) for r in range(4)]
    return jnp.concatenate(rots, axis=0)  # (Cout, Cin, k, k)


@functools.partial(jax.jit, static_argnames=("kernel_size", "stride", "padding", "tile_m"))
def groupy_conv1(x_nchw, weight, gamma, beta, *, kernel_size, stride, padding, tile_m=512):
    n, cin, h, w = x_nchw.shape
    cout = weight.shape[0]
    k = kernel_size

    # bf16-first transposed im2col (patches are MXU operands; all accumulation stays f32).
    x_nhwc = jnp.transpose(x_nchw, (0, 2, 3, 1)).astype(jnp.bfloat16)
    patches_t, hout, wout = _im2col_t(x_nhwc, k, stride, padding)      # (K, M) bf16
    k_dim, m_dim = patches_t.shape

    # (Cout, Cin, k, k) -> (Cout, kh, kw, cin) -> (Cout, K), matching im2col's K ordering.
    w2d = jnp.transpose(weight, (0, 2, 3, 1)).reshape(cout, k_dim).astype(jnp.bfloat16)

    # Padding: f32-sublane-aligned Cout, native-bf16 (16-sublane) K, lane-dense M tiles.
    c_sub = _round_up(cout, 8)
    k_pad = _round_up(k_dim, 16)
    tile_m = max(128, _round_up(tile_m, 128))
    tile_m = min(tile_m, _round_up(m_dim, 128))
    # Keep the double-buffered bf16 patches tile comfortably inside v7x's 64 MiB VMEM.
    while tile_m > 128 and 2 * (k_pad * tile_m * 2) > 16 * 1024 * 1024:
        tile_m //= 2
    m_pad = _round_up(m_dim, tile_m)
    num_m_tiles = m_pad // tile_m

    patches_p = jnp.pad(patches_t, ((0, k_pad - k_dim), (0, m_pad - m_dim)))
    w_p = jnp.pad(w2d, ((0, c_sub - cout), (0, k_pad - k_dim)))
    gamma_p = jnp.pad(gamma.astype(jnp.float32), (0, c_sub - cout)).reshape(c_sub, 1)
    beta_p = jnp.pad(beta.astype(jnp.float32), (0, c_sub - cout)).reshape(c_sub, 1)

    kernel = functools.partial(
        _fused_conv_bn_relu_kernel, m_true=float(m_dim), tile_m=tile_m)

    out_p = pl.pallas_call(
        kernel,
        out_shape=jax.ShapeDtypeStruct((c_sub, m_pad), jnp.float32),
        grid=(num_m_tiles,),
        in_specs=[
            pl.BlockSpec((c_sub, k_pad), lambda m: (0, 0)),   # weights (resident)
            pl.BlockSpec((k_pad, tile_m), lambda m: (0, m)),  # patches tile (streamed once)
            pl.BlockSpec((c_sub, 1), lambda m: (0, 0)),       # BN gamma (resident)
            pl.BlockSpec((c_sub, 1), lambda m: (0, 0)),       # BN beta  (resident)
        ],
        # Resident output slab: constant block index over the (arbitrary) M axis ->
        # written back to HBM once, after the in-kernel BN+ReLU finalize.
        out_specs=pl.BlockSpec((c_sub, m_pad), lambda m: (0, 0)),
        scratch_shapes=[pltpu.VMEM((c_sub, 1), jnp.float32),
                        pltpu.VMEM((c_sub, 1), jnp.float32)],
        compiler_params=pltpu.CompilerParams(
            dimension_semantics=("arbitrary",),
            vmem_limit_bytes=32 * 1024 * 1024),
        cost_estimate=pl.CostEstimate(
            flops=2 * m_pad * k_pad * c_sub, transcendentals=0,
            bytes_accessed=(k_pad * m_pad + c_sub * k_pad) * 2
                           + 2 * c_sub * 4 + c_sub * m_pad * 4),
    )(w_p, patches_p, gamma_p, beta_p)

    # (Cout, M) -> (Cout, N, Hout, Wout) -> NCHW, dropping padded channels / columns.
    out = out_p[:cout, :m_dim].reshape(cout, n, hout, wout)
    return jnp.transpose(out, (1, 0, 2, 3))


if __name__ == "__main__":
    # Small shapes consistent with the module: N=2, Cin=4, H=W=16, Cout=8, k=3, s=1, p=1.
    in_channels, out_channels = 4, 8
    kernel_size, stride, padding = 3, 1, 1

    key = jax.random.PRNGKey(0)
    kx, kw, kg, kb = jax.random.split(key, 4)

    x = jax.random.normal(kx, (2, in_channels, 16, 16), jnp.float32)
    weight = make_precm1_weight(kw, in_channels, out_channels, kernel_size)
    gamma = 1.0 + 0.1 * jax.random.normal(kg, (out_channels,), jnp.float32)  # BN weight
    beta = 0.1 * jax.random.normal(kb, (out_channels,), jnp.float32)          # BN bias

    y = groupy_conv1(
        x, weight, gamma, beta,
        kernel_size=kernel_size, stride=stride, padding=padding,
    )
    jax.block_until_ready(y)

    assert y.shape == (2, out_channels, 16, 16), y.shape
    assert bool(jnp.all(y >= 0.0)), "ReLU output must be non-negative"

    # f32 reference: standard conv with the same (rotated) weights + train-mode BN + ReLU.
    conv = jax.lax.conv_general_dilated(
        x, weight, window_strides=(stride, stride),
        padding=[(padding, padding), (padding, padding)],
        dimension_numbers=("NCHW", "OIHW", "NCHW"))
    mu = jnp.mean(conv, axis=(0, 2, 3), keepdims=True)
    var = jnp.mean((conv - mu) ** 2, axis=(0, 2, 3), keepdims=True)
    ref = jnp.maximum(
        (conv - mu) * jax.lax.rsqrt(var + _BN_EPS) * gamma.reshape(1, -1, 1, 1)
        + beta.reshape(1, -1, 1, 1), 0.0)
    max_err = float(jnp.max(jnp.abs(y - ref)))
    assert max_err < 1e-1, f"mismatch vs f32 reference: {max_err}"
    print("KERNEL_OK")
</pallas_src>

<mosaic_0001>
module attributes {stable_mosaic.version = 11 : i64} {
  func.func @_fused_conv_bn_relu_kernel(%arg0: i32, %arg1: memref<8x48xbf16, #tpu.memory_space<vmem>>, %arg2: memref<48x512xbf16, #tpu.memory_space<vmem>>, %arg3: memref<8x1xf32, #tpu.memory_space<vmem>>, %arg4: memref<8x1xf32, #tpu.memory_space<vmem>>, %arg5: memref<8x512xf32, #tpu.memory_space<vmem>>, %arg6: memref<8x1xf32, #tpu.memory_space<vmem>>, %arg7: memref<8x1xf32, #tpu.memory_space<vmem>>) attributes {dimension_semantics = [#tpu.dimension_semantics<arbitrary>], iteration_bounds = array<i64: 1>, scalar_prefetch = 0 : i64, scratch_operands = 2 : i64, tpu.core_type = #tpu.core_type<tc>, window_params = [{pipeline_mode = #tpu.pipeline_mode<synchronous>, transform_indices = @transform_0, window_bounds = array<i64: 8, 48>}, {transform_indices = @transform_1, window_bounds = array<i64: 48, 512>}, {pipeline_mode = #tpu.pipeline_mode<synchronous>, transform_indices = @transform_2, window_bounds = array<i64: 8, 1>}, {pipeline_mode = #tpu.pipeline_mode<synchronous>, transform_indices = @transform_3, window_bounds = array<i64: 8, 1>}, {pipeline_mode = #tpu.pipeline_mode<synchronous>, transform_indices = @transform_4, window_bounds = array<i64: 8, 512>}]} {
    %c0_i32 = arith.constant 0 : i32
    %0 = arith.cmpi eq, %arg0, %c0_i32 : i32
    %1 = arith.extui %0 : i1 to i32
    %c0_i32_0 = arith.constant 0 : i32
    %2 = arith.cmpi ne, %1, %c0_i32_0 : i32
    scf.if %2 {
      %cst_17 = arith.constant 0.000000e+00 : f32
      %24 = vector.broadcast %cst_17 : f32 to vector<8x1xf32>
      %c0_18 = arith.constant 0 : index
      %c0_19 = arith.constant 0 : index
      %25 = vector.load %arg6[%c0_18, %c0_19] : memref<8x1xf32, #tpu.memory_space<vmem>>, vector<8x1xf32>
      tpu.vector_store %arg6[%c0_18, %c0_19], %24 {strides = array<i32>} : memref<8x1xf32, #tpu.memory_space<vmem>>, vector<8x1xf32>,
      %cst_20 = arith.constant 0.000000e+00 : f32
      %26 = vector.broadcast %cst_20 : f32 to vector<8x1xf32>
      %c0_21 = arith.constant 0 : index
      %c0_22 = arith.constant 0 : index
      %27 = vector.load %arg7[%c0_21, %c0_22] : memref<8x1xf32, #tpu.memory_space<vmem>>, vector<8x1xf32>
      tpu.vector_store %arg7[%c0_21, %c0_22], %26 {strides = array<i32>} : memref<8x1xf32, #tpu.memory_space<vmem>>, vector<8x1xf32>,
    } else {
    }
    %c0 = arith.constant 0 : index
    %c0_1 = arith.constant 0 : index
    %3 = vector.load %arg1[%c0, %c0_1] : memref<8x48xbf16, #tpu.memory_space<vmem>>, vector<8x48xbf16>
    %c0_2 = arith.constant 0 : index
    %c0_3 = arith.constant 0 : index
    %4 = vector.load %arg2[%c0_2, %c0_3] : memref<48x512xbf16, #tpu.memory_space<vmem>>, vector<48x512xbf16>
    %cst = arith.constant dense<0.000000e+00> : vector<8x512xf32>
    %5 = tpu.matmul %3, %4, %cst {dimension_numbers = #tpu.dot_dimension_numbers<[1], [0], [0], [1], [0, 0, 1, 1], [], []>} : vector<8x48xbf16>, vector<48x512xbf16>, vector<8x512xf32> -> vector<8x512xf32>
    %c0_4 = arith.constant 0 : index
    %c0_5 = arith.constant 0 : index
    %6 = vector.load %arg6[%c0_4, %c0_5] : memref<8x1xf32, #tpu.memory_space<vmem>>, vector<8x1xf32>
    %cst_6 = arith.constant dense<0.000000e+00> : vector<8xf32>
    %7 = vector.multi_reduction <add>, %5, %cst_6 [1] : vector<8x512xf32> to vector<8xf32>
    %8 = vector.shape_cast %7 : vector<8xf32> to vector<8x1xf32>
    %9 = arith.addf %6, %8 : vector<8x1xf32>
    %c0_7 = arith.constant 0 : index
    %c0_8 = arith.constant 0 : index
    %10 = vector.load %arg6[%c0_7, %c0_8] : memref<8x1xf32, #tpu.memory_space<vmem>>, vector<8x1xf32>
    tpu.vector_store %arg6[%c0_7, %c0_8], %9 {strides = array<i32>} : memref<8x1xf32, #tpu.memory_space<vmem>>, vector<8x1xf32>,
    %c0_9 = arith.constant 0 : index
    %c0_10 = arith.constant 0 : index
    %11 = vector.load %arg7[%c0_9, %c0_10] : memref<8x1xf32, #tpu.memory_space<vmem>>, vector<8x1xf32>
    %12 = arith.mulf %5, %5 : vector<8x512xf32>
    %cst_11 = arith.constant dense<0.000000e+00> : vector<8xf32>
    %13 = vector.multi_reduction <add>, %12, %cst_11 [1] : vector<8x512xf32> to vector<8xf32>
    %14 = vector.shape_cast %13 : vector<8xf32> to vector<8x1xf32>
    %15 = arith.addf %11, %14 : vector<8x1xf32>
    %c0_12 = arith.constant 0 : index
    %c0_13 = arith.constant 0 : index
    %16 = vector.load %arg7[%c0_12, %c0_13] : memref<8x1xf32, #tpu.memory_space<vmem>>, vector<8x1xf32>
    tpu.vector_store %arg7[%c0_12, %c0_13], %15 {strides = array<i32>} : memref<8x1xf32, #tpu.memory_space<vmem>>, vector<8x1xf32>,
    %c512_i32 = arith.constant 512 : i32
    %17 = arith.muli %arg0, %c512_i32 : i32
    %18 = tpu.assume_multiple %17, 128 : i32
    %c0_14 = arith.constant 0 : index
    %19 = arith.index_cast %18 : i32 to index
    %20 = vector.load %arg5[%c0_14, %19] : memref<8x512xf32, #tpu.memory_space<vmem>>, vector<8x512xf32>
    tpu.vector_store %arg5[%c0_14, %19], %5 {strides = array<i32>} : memref<8x512xf32, #tpu.memory_space<vmem>>, vector<8x512xf32>,
    %c0_i32_15 = arith.constant 0 : i32
    %21 = arith.cmpi eq, %arg0, %c0_i32_15 : i32
    %22 = arith.extui %21 : i1 to i32
    %c0_i32_16 = arith.constant 0 : i32
    %23 = arith.cmpi ne, %22, %c0_i32_16 : i32
    scf.if %23 {
      %c0_17 = arith.constant 0 : index
      %c0_18 = arith.constant 0 : index
      %24 = vector.load %arg6[%c0_17, %c0_18] : memref<8x1xf32, #tpu.memory_space<vmem>>, vector<8x1xf32>
      %cst_19 = arith.constant 0.001953125 : f32
      %25 = vector.broadcast %cst_19 : f32 to vector<8x1xf32>
      %26 = arith.mulf %24, %25 : vector<8x1xf32>
      %c0_20 = arith.constant 0 : index
      %c0_21 = arith.constant 0 : index
      %27 = vector.load %arg7[%c0_20, %c0_21] : memref<8x1xf32, #tpu.memory_space<vmem>>, vector<8x1xf32>
      %cst_22 = arith.constant 0.001953125 : f32
      %28 = vector.broadcast %cst_22 : f32 to vector<8x1xf32>
      %29 = arith.mulf %27, %28 : vector<8x1xf32>
      %30 = arith.mulf %26, %26 : vector<8x1xf32>
      %31 = arith.subf %29, %30 : vector<8x1xf32>
      %cst_23 = arith.constant 0.000000e+00 : f32
      %32 = vector.broadcast %cst_23 : f32 to vector<8x1xf32>
      %33 = arith.maximumf %31, %32 : vector<8x1xf32>
      %cst_24 = arith.constant 9.99999974E-6 : f32
      %34 = vector.broadcast %cst_24 : f32 to vector<8x1xf32>
      %35 = arith.addf %33, %34 : vector<8x1xf32>
      %36 = math.rsqrt %35 : vector<8x1xf32>
      %c0_25 = arith.constant 0 : index
      %c0_26 = arith.constant 0 : index
      %37 = vector.load %arg3[%c0_25, %c0_26] : memref<8x1xf32, #tpu.memory_space<vmem>>, vector<8x1xf32>
      %38 = arith.mulf %37, %36 : vector<8x1xf32>
      %c0_27 = arith.constant 0 : index
      %c0_28 = arith.constant 0 : index
      %39 = vector.load %arg4[%c0_27, %c0_28] : memref<8x1xf32, #tpu.memory_space<vmem>>, vector<8x1xf32>
      %40 = arith.mulf %26, %38 : vector<8x1xf32>
      %41 = arith.subf %39, %40 : vector<8x1xf32>
      %c0_29 = arith.constant 0 : index
      %c0_30 = arith.constant 0 : index
      %42 = vector.load %arg5[%c0_29, %c0_30] : memref<8x512xf32, #tpu.memory_space<vmem>>, vector<8x512xf32>
      %43 = vector.broadcast %38 : vector<8x1xf32> to vector<8x512xf32>
      %44 = arith.mulf %42, %43 : vector<8x512xf32>
      %45 = vector.broadcast %41 : vector<8x1xf32> to vector<8x512xf32>
      %46 = arith.addf %44, %45 : vector<8x512xf32>
      %cst_31 = arith.constant 0.000000e+00 : f32
      %47 = vector.broadcast %cst_31 : f32 to vector<8x512xf32>
      %48 = arith.maximumf %46, %47 : vector<8x512xf32>
      %c0_32 = arith.constant 0 : index
      %c0_33 = arith.constant 0 : index
      %49 = vector.load %arg5[%c0_32, %c0_33] : memref<8x512xf32, #tpu.memory_space<vmem>>, vector<8x512xf32>
      tpu.vector_store %arg5[%c0_32, %c0_33], %48 {strides = array<i32>} : memref<8x512xf32, #tpu.memory_space<vmem>>, vector<8x512xf32>,
    } else {
    }
    return
  }
  func.func @transform_0(%arg0: i32) -> (i32, i32) {
    %c0_i32 = arith.constant 0 : i32
    %c0_i32_0 = arith.constant 0 : i32
    %c0_i32_1 = arith.constant 0 : i32
    return %c0_i32, %c0_i32_0 : i32, i32
  }
  func.func @transform_1(%arg0: i32) -> (i32, i32) {
    %c0_i32 = arith.constant 0 : i32
    %c0_i32_0 = arith.constant 0 : i32
    return %c0_i32, %arg0 : i32, i32
  }
  func.func @transform_2(%arg0: i32) -> (i32, i32) {
    %c0_i32 = arith.constant 0 : i32
    %c0_i32_0 = arith.constant 0 : i32
    %c0_i32_1 = arith.constant 0 : i32
    return %c0_i32, %c0_i32_0 : i32, i32
  }
  func.func @transform_3(%arg0: i32) -> (i32, i32) {
    %c0_i32 = arith.constant 0 : i32
    %c0_i32_0 = arith.constant 0 : i32
    %c0_i32_1 = arith.constant 0 : i32
    return %c0_i32, %c0_i32_0 : i32, i32
  }
  func.func @transform_4(%arg0: i32) -> (i32, i32) {
    %c0_i32 = arith.constant 0 : i32
    %c0_i32_0 = arith.constant 0 : i32
    %c0_i32_1 = arith.constant 0 : i32
    return %c0_i32, %c0_i32_0 : i32, i32
  }
}

</mosaic_0001>

<bundles_post_ra>
// kernel: groupy_conv1.1
= control target key start
LH: loop header
LB: loop body
LE: loop exit
PB: predicated region body
PF: predicated region fallthrough
CT: control target
= control target key end

     0   :  { %vm98_vm0 = vcmask 392192   ;;  %vm22_vm1 = vcmask 7168   ;;  %v316_v37 = vmov 0.0   ;;  %v317_v56 = vmov 0   ;;  %s440_s1 = inlined_call_operand.vmem [shape: bf16[48,512], index: 1, kind: input, shape index: {}]   ;;  %s441_s0 = inlined_call_operand.vmem [shape: bf16[8,48], index: 0, kind: input, shape index: {}]   ;;  %s442_s2 = inlined_call_operand.vmem [shape: f32[8,1], index: 2, kind: input, shape index: {}]   ;;  %s443_s3 = inlined_call_operand.vmem [shape: f32[8,1], index: 3, kind: input, shape index: {}]   ;;  %s444_s4 = inlined_call_operand.vmem [shape: f32[8,512], index: 4, kind: output, shape index: {}]  }
   0x1   :  { %v280_v0 = vld [vmem:[%s440_s1 + $0x40] sm:$0xf]  ;;  %v308_v1 = vld [vmem:[%s440_s1 + $0x4c] sm:$0xf0]  ;;  %v306_v2 = vld [vmem:[%s440_s1 + $0x44] sm:$0xf]  ;;  %312 = vset.pattern.permute.xlu1 %v317_v56  ;;  %313 = vset.pattern.permute.xlu0 %v317_v56 }
   0x2   :  { %v281_v3 = vor.u32 %v308_v1, %v280_v0  ;;  %v282_v4 = vld [vmem:[%s440_s1 + $0x50] sm:$0xf0]  ;;  %v288_v5 = vld [vmem:[%s440_s1 + $0x48] sm:$0xf]  ;;  %v309_v6 = vld [vmem:[%s440_s1 + $0x54] sm:$0xf0] }
   0x3   :  { %v285_v7 = vor.u32 %v306_v2, %v282_v4  ;;  %v289_v8 = vor.u32 %v309_v6, %v288_v5  ;;  %v307_v9 = vld [vmem:[%s440_s1 + $0x4c] sm:$0xf]  ;;  %v290_v10 = vld [vmem:[%s440_s1 + $0x58] sm:$0xf0]  ;;  %v264_v11 = vld [vmem:[%s440_s1 + $0x20] sm:$0xf] }
   0x4   :  { %107 = vmatpush.bf16.msra.mxu0 %v281_v3  ;;  %v293_v12 = vor.u32 %v307_v9, %v290_v10  ;;  %v304_v13 = vld [vmem:[%s440_s1 + $0x2c] sm:$0xf0]  ;;  %v302_v14 = vld [vmem:[%s440_s1 + $0x24] sm:$0xf]  ;;  %v266_v15 = vld [vmem:[%s440_s1 + $0x30] sm:$0xf0] }
   0x5   :  { %120 = vmatpush.bf16.msra.mxu1 %v285_v7  ;;  %133 = vmatpush.bf16.msra.mxu2 %v289_v8  ;;  %v265_v16 = vor.u32 %v304_v13, %v264_v11  ;;  %v269_v17 = vor.u32 %v302_v14, %v266_v15  ;;  %v272_v18 = vld [vmem:[%s440_s1 + $0x28] sm:$0xf]  ;;  %v305_v19 = vld [vmem:[%s440_s1 + $0x34] sm:$0xf0]  ;;  %v303_v20 = vld [vmem:[%s440_s1 + $0x2c] sm:$0xf] }
   0x6   :  { %146 = vmatpush.bf16.msra.mxu3 %v293_v12  ;;  %v273_v21 = vor.u32 %v305_v19, %v272_v18  ;;  %v274_v22 = vld [vmem:[%s440_s1 + $0x38] sm:$0xf0]  ;;  %v248_v23 = vld [vmem:[%s440_s1] sm:$0xf]  ;;  %v300_v24 = vld [vmem:[%s440_s1 + $0xc] sm:$0xf0] }
   0x7   :  { %v277_v25 = vor.u32 %v303_v20, %v274_v22  ;;  %v298_v26 = vld [vmem:[%s440_s1 + $0x4] sm:$0xf]  ;;  %v250_v27 = vld [vmem:[%s440_s1 + $0x10] sm:$0xf0]  ;;  %v256_v28 = vld [vmem:[%s440_s1 + $0x8] sm:$0xf]  ;;  %v249_v29 = vor.u32 %v300_v24, %v248_v23 }
   0x8   :  { %108 = vmatpush.bf16.msra.mxu0 %v265_v16  ;;  %v301_v30 = vld [vmem:[%s440_s1 + $0x14] sm:$0xf0]  ;;  %v299_v31 = vld [vmem:[%s440_s1 + $0xc] sm:$0xf]  ;;  %v258_v32 = vld [vmem:[%s440_s1 + $0x18] sm:$0xf0]  ;;  %v253_v33 = vor.u32 %v298_v26, %v250_v27 }
   0x9   :  { %121 = vmatpush.bf16.msra.mxu1 %v269_v17  ;;  %134 = vmatpush.bf16.msra.mxu2 %v273_v21  ;;  %v257_v34 = vor.u32 %v301_v30, %v256_v28  ;;  %v261_v35 = vor.u32 %v299_v31, %v258_v32  ;;  %v25_v36 = vld [vmem:[%s441_s0] sm:$0xf]  ;;  %23 = vst.msk [vmem:[#allocation2] sm:$0xff] %vm22_vm1, %v316_v37 }
   0xa   :  { %147 = vmatpush.bf16.msra.mxu3 %v277_v25  ;;  %24 = vst.msk [vmem:[#allocation3] sm:$0xff] %vm22_vm1, %v316_v37  ;;  %v205_v13 = vld [vmem:[%s442_s2] sm:$0xff] }
   0xb   :  { %v207_v17 = vld [vmem:[%s443_s3] sm:$0xff] }
   0xc   :  { %109 = vmatpush.bf16.msra.mxu0 %v249_v29 }
   0xd   :  { %122 = vmatpush.bf16.msra.mxu1 %v253_v33  ;;  %135 = vmatpush.bf16.msra.mxu2 %v257_v34 }
   0xe   :  { %148 = vmatpush.bf16.msra.mxu3 %v261_v35 }
   0xf   :  { %294 = vmatmul.msk.bf16.vlgmr.msra.gmra.mxu0 %vm98_vm0, %v25_v36 }
  0x10   :  { %295 = vmatmul.msk.bf16.vlgmr.msra.gmra.mxu1 %vm98_vm0, %v25_v36  ;;  %296 = vmatmul.msk.bf16.vlgmr.msra.gmra.mxu2 %vm98_vm0, %v25_v36  ;;  %v154_v57 = vld [vmem:[#allocation2] sm:$0xff] }
  0x11   :  { %297 = vmatmul.msk.bf16.vlgmr.msra.gmra.mxu3 %vm98_vm0, %v25_v36  ;;  %v163_v60 = vld [vmem:[#allocation3] sm:$0xff] }
  0x8c   :  { %v111_v38 = vpop.f32.mrf.mxu0 }
  0x8d   :  { %v124_v39 = vpop.f32.mrf.mxu1  ;;  %v164_v41 = vmul.f32 %v111_v38, %v111_v38 }
  0x8e   :  { %v155_v40 = vadd.f32 %v124_v39, %v111_v38  ;;  %v165_v42 = vmul.f32 %v124_v39, %v124_v39 }
  0x90   :  { %v168_v50 = vadd.f32 %v165_v42, %v164_v41 }
  0x93   :  { %v137_v43 = vpop.f32.mrf.mxu2 }
  0x94   :  { %v150_v44 = vpop.f32.mrf.mxu3  ;;  %v113_v45 = vpop.f32.mrf.mxu0  ;;  %v156_v46 = vadd.f32 %v155_v40, %v137_v43  ;;  %v166_v48 = vmul.f32 %v137_v43, %v137_v43 }
  0x95   :  { %v126_v47 = vpop.f32.mrf.mxu1  ;;  %v167_v51 = vmul.f32 %v150_v44, %v150_v44 }
  0x96   :  { %v157_v49 = vadd.f32 %v156_v46, %v150_v44  ;;  %v169_v52 = vadd.f32 %v168_v50, %v166_v48 }
  0x98   :  { %158 = vadd.xlane.f32.xlu0 %v157_v49  ;;  %v170_v55 = vadd.f32 %v169_v52, %v167_v51 }
  0x9b   :  { %v139_v53 = vpop.f32.mrf.mxu2 }
  0x9c   :  { %v152_v54 = vpop.f32.mrf.mxu3 }
  0xa0   :  { %171 = vadd.xlane.f32.xlu0 %v170_v55 }
 0x10b   :  { %v159_v58 = vpop.xlane.xlu0 %158 }
 0x10c   :  { %v160_v59 = vadd.f32 %v159_v58, %v154_v57 }
 0x10e   :  { %162 = vst.msk [vmem:[#allocation2] sm:$0xff] %vm22_vm1, %v160_v59 }
 0x113   :  { %v172_v61 = vpop.xlane.xlu0 %171 }
 0x114   :  { %v173_v62 = vadd.f32 %v172_v61, %v163_v60 }
 0x115   :  { %v187_v63 = vld [vmem:[#allocation2] sm:$0xff] }
 0x116   :  { %174 = vst.msk [vmem:[#allocation3] sm:$0xff] %vm22_vm1, %v173_v62  ;;  %v188_v0 = vmul.f32 0.001953125, %v187_v63 }
 0x118   :  { %v191_v3 = vmul.f32 %v188_v0, %v188_v0 }
 0x11d   :  { %v189_v1 = vld [vmem:[#allocation3] sm:$0xff] }
 0x11e   :  { %v190_v2 = vmul.f32 0.001953125, %v189_v1 }
 0x120   :  { %v192_v4 = vsub.f32 %v190_v2, %v191_v3 }
 0x122   :  { %v193_v5 = vmax.f32 %v192_v4, 0.0 }
 0x124   :  { %v194_v6 = vadd.f32 1e-05, %v193_v5 }
 0x126   :  { %314 = vrsqrt.f32 %v194_v6  ;;  %vm201_vm3 = vweird.f32 %v194_v6 }
 0x12c   :  { %v315_v7 = vpop.eup %314 }
 0x12d   :  { %v196_v8 = vmul.f32 %v315_v7, %v194_v6  ;;  %vm202_vm2 = vweird.f32 %v315_v7 }
 0x12e   :  { %vm203_vm4 = vmor %vm201_vm3, %vm202_vm2 }
 0x12f   :  { %v197_v9 = vmul.f32 %v315_v7, %v196_v8 }
 0x131   :  { %v198_v10 = vmul.f32 0.5, %v197_v9 }
 0x133   :  { %v199_v11 = vsub.f32 1.5, %v198_v10 }
 0x135   :  { %v200_v12 = vmul.f32 %v315_v7, %v199_v11 }
 0x137   :  { %v204_v14 = vsel %vm203_vm4, %v315_v7, %v200_v12 }
 0x138   :  { %v206_v15 = vmul.f32 %v205_v13, %v204_v14 }
 0x13a   :  { %216 = vperm.xlu1 %312, %v206_v15   ;;  %v208_v16 = vmul.f32 %v206_v15, %v188_v0 }
 0x13c   :  { %v209_v18 = vsub.f32 %v207_v17, %v208_v16 }
 0x142   :  { %225 = vperm.xlu1 %312, %v209_v18  }
 0x1ac   :  { %v217_v19 = vpop.permute.xlu1 %216 }
 0x1ad   :  { %v219_v20 = vmul.f32 %v217_v19, %v111_v38  ;;  %v220_v21 = vmul.f32 %v217_v19, %v124_v39  ;;  %v221_v22 = vmul.f32 %v217_v19, %v137_v43  ;;  %v222_v23 = vmul.f32 %v217_v19, %v150_v44 }
 0x1b4   :  { %v226_v24 = vpop.permute.xlu1 %225 }
 0x1b5   :  { %v228_v25 = vadd.f32 %v226_v24, %v219_v20  ;;  %v229_v26 = vadd.f32 %v226_v24, %v220_v21  ;;  %v230_v27 = vadd.f32 %v226_v24, %v221_v22  ;;  %v231_v28 = vadd.f32 %v226_v24, %v222_v23 }
 0x1b7   :  { %v232_v29 = vmax.f32 %v228_v25, 0.0  ;;  %v233_v30 = vmax.f32 %v229_v26, 0.0  ;;  %v234_v31 = vmax.f32 %v230_v27, 0.0  ;;  %v235_v32 = vmax.f32 %v231_v28, 0.0 }
 0x1b9   :  { %236 = vst [vmem:[%s444_s4] sm:$0xff] %v232_v29 }
 0x1ba   :  { %237 = vst [vmem:[%s444_s4 + $0x8] sm:$0xff] %v233_v30 }
 0x1bb   :  { %238 = vst [vmem:[%s444_s4 + $0x10] sm:$0xff] %v234_v31 }
 0x1bc   :  { %239 = vst [vmem:[%s444_s4 + $0x18] sm:$0xff] %v235_v32 }

</bundles_post_ra>
